<compile_context>
chip_gen: v6e
topology: v6e:2x2x1
jax: 0.10.0
libtpu: 0.0.40
codegen_flags: <defaults>
</compile_context>

<pallas_src>
import functools

import jax
import jax.numpy as jnp
from jax import lax
from jax.experimental import pallas as pl
from jax.experimental.pallas import tpu as pltpu

_TM = 256   # M tile (spatial positions)
_TN = 512   # N tile (output channels)


def _round_up(x, m):
    return (x + m - 1) // m * m


def _choose_tk(k):
    """Pick a K tile that divides K (no padding of the big im2col matrix)."""
    for tk in (512, 384, 256, 128):
        if k % tk == 0:
            return tk, k
    if k <= 1024:
        return k, k                     # single full-K block (allowed: full dim)
    return 128, _round_up(k, 128)       # rare fallback: pad K to 128


# ----------------------------------------------------------------------------
# Pallas kernel: bf16 matmul, f32 accumulation, fused per-channel affine
# (+ optional residual add) (+ optional ReLU)
#   out = relu( (A @ B) * scale + shift [+ residual] )
# ----------------------------------------------------------------------------
def _mm_affine_kernel(a_ref, b_ref, s_ref, t_ref, *rest, relu, has_res):
    if has_res:
        r_ref, o_ref, acc_ref = rest
    else:
        o_ref, acc_ref = rest
    k = pl.program_id(2)

    @pl.when(k == 0)
    def _():
        acc_ref[...] = jnp.zeros_like(acc_ref)

    acc_ref[...] += jnp.dot(a_ref[...], b_ref[...],
                            preferred_element_type=jnp.float32)

    @pl.when(k == pl.num_programs(2) - 1)
    def _():
        y = acc_ref[...] * s_ref[...] + t_ref[...]
        if has_res:
            y = y + r_ref[...].astype(jnp.float32)
        if relu:
            y = jnp.maximum(y, 0.0)
        o_ref[...] = y.astype(o_ref.dtype)


def matmul_affine(a, b, scale, shift, residual, *, relu, out_dtype):
    """a:[M,K] bf16, b:[K,N] bf16, scale/shift:[N] f32 -> [M,N] out_dtype."""
    m, k = a.shape
    _, n = b.shape
    tm = m if m < _TM else _TM
    tn = n if n < _TN else _TN
    tk, kp = _choose_tk(k)
    if kp != k:  # never hit for this model; kept for generality
        a = jnp.pad(a, ((0, 0), (0, kp - k)))
        b = jnp.pad(b, ((0, kp - k), (0, 0)))
    nk = kp // tk

    s2 = scale.reshape(1, n).astype(jnp.float32)
    t2 = shift.reshape(1, n).astype(jnp.float32)

    in_specs = [
        pl.BlockSpec((tm, tk), lambda i, j, kk: (i, kk)),
        pl.BlockSpec((tk, tn), lambda i, j, kk: (kk, j)),
        pl.BlockSpec((1, tn), lambda i, j, kk: (0, j)),
        pl.BlockSpec((1, tn), lambda i, j, kk: (0, j)),
    ]
    args = [a, b, s2, t2]
    has_res = residual is not None
    if has_res:
        in_specs.append(pl.BlockSpec((tm, tn), lambda i, j, kk: (i, j)))
        args.append(residual)

    return pl.pallas_call(
        functools.partial(_mm_affine_kernel, relu=relu, has_res=has_res),
        out_shape=jax.ShapeDtypeStruct((m, n), out_dtype),
        grid_spec=pltpu.PrefetchScalarGridSpec(
            num_scalar_prefetch=0,
            grid=(pl.cdiv(m, tm), pl.cdiv(n, tn), nk),
            in_specs=in_specs,
            out_specs=pl.BlockSpec((tm, tn), lambda i, j, kk: (i, j)),
            scratch_shapes=[pltpu.VMEM((tm, tn), jnp.float32)],
        ),
        compiler_params=pltpu.CompilerParams(
            dimension_semantics=("parallel", "parallel", "arbitrary")),
    )(*args)


# ----------------------------------------------------------------------------
# Convolution = im2col (NHWC, bf16) + Pallas matmul with fused BN / bias /
# residual / ReLU epilogue.
# TODO(synk): lower 3x3/7x7 convs directly from the NHWC feature map with a
# per-tap grid axis (no im2col materialization); currently only 1x1 convs
# avoid the patch duplication.
# ----------------------------------------------------------------------------
def _im2col(x, kh, kw, stride, dilation, padding):
    n, h, w, c = x.shape
    if padding > 0:
        x = jnp.pad(x, ((0, 0), (padding, padding), (padding, padding), (0, 0)))
    oh = (h + 2 * padding - dilation * (kh - 1) - 1) // stride + 1
    ow = (w + 2 * padding - dilation * (kw - 1) - 1) // stride + 1
    if kh == 1 and kw == 1:
        if stride != 1:
            x = x[:, ::stride, ::stride, :]
        return x.reshape(n * oh * ow, c), (oh, ow)
    cols = []
    for i in range(kh):
        for j in range(kw):
            r0, c0 = i * dilation, j * dilation
            cols.append(x[:, r0:r0 + stride * (oh - 1) + 1:stride,
                             c0:c0 + stride * (ow - 1) + 1:stride, :])
    patches = jnp.stack(cols, axis=3)                     # [N, OH, OW, KH*KW, C]
    return patches.reshape(n * oh * ow, kh * kw * c), (oh, ow)


@functools.partial(jax.jit,
                   static_argnames=("stride", "padding", "dilation", "relu",
                                    "out_dtype"))
def conv2d(x, w, scale, shift, residual=None, *, stride=1, padding=0,
           dilation=1, relu=False, out_dtype=jnp.bfloat16):
    """x: NHWC, w: [Cout, Cin, KH, KW] (PyTorch layout). Returns NHWC."""
    n = x.shape[0]
    cout, cin, kh, kw = w.shape
    a, (oh, ow) = _im2col(x.astype(jnp.bfloat16), kh, kw, stride, dilation,
                          padding)
    b = jnp.transpose(w, (2, 3, 1, 0)).reshape(kh * kw * cin, cout)
    b = b.astype(jnp.bfloat16)
    res2d = None if residual is None else residual.reshape(n * oh * ow, cout)
    y = matmul_affine(a, b, scale, shift, res2d, relu=relu, out_dtype=out_dtype)
    return y.reshape(n, oh, ow, cout)


# ----------------------------------------------------------------------------
# JAX glue ops (not the hot path)
# ----------------------------------------------------------------------------
@jax.jit
def maxpool_3x3_s2(x):
    # TODO(synk): MaxPool2d(3, 2, 1) kept as JAX reduce_window glue (tiny).
    return lax.reduce_window(x, jnp.array(-jnp.inf, x.dtype), lax.max,
                             (1, 3, 3, 1), (1, 2, 2, 1),
                             ((0, 0), (1, 1), (1, 1), (0, 0)))


@functools.partial(jax.jit, static_argnames=("out_h", "out_w"))
def bilinear_resize(x, out_h, out_w):
    # TODO(synk): bilinear (align_corners=False) upsample kept as gather glue.
    n, h, w, c = x.shape
    xf = x.astype(jnp.float32)
    ys = jnp.clip((jnp.arange(out_h, dtype=jnp.float32) + 0.5) * (h / out_h) - 0.5,
                  0.0, h - 1.0)
    xs = jnp.clip((jnp.arange(out_w, dtype=jnp.float32) + 0.5) * (w / out_w) - 0.5,
                  0.0, w - 1.0)
    y0 = jnp.floor(ys).astype(jnp.int32)
    x0 = jnp.floor(xs).astype(jnp.int32)
    y1 = jnp.minimum(y0 + 1, h - 1)
    x1 = jnp.minimum(x0 + 1, w - 1)
    wy = (ys - y0)[None, :, None, None]
    wx = (xs - x0)[None, None, :, None]

    def gather(yi, xi):
        return jnp.take(jnp.take(xf, yi, axis=1), xi, axis=2)

    v00, v01 = gather(y0, x0), gather(y0, x1)
    v10, v11 = gather(y1, x0), gather(y1, x1)
    out = (v00 * (1 - wy) * (1 - wx) + v01 * (1 - wy) * wx
           + v10 * wy * (1 - wx) + v11 * wy * wx)
    return out.astype(x.dtype)


# ----------------------------------------------------------------------------
# Deterministic synthetic parameters (eval-mode BN folded into scale/shift)
# ----------------------------------------------------------------------------
class ParamGen:
    def __init__(self, seed):
        self._key = jax.random.PRNGKey(seed)

    def _next(self):
        self._key, sub = jax.random.split(self._key)
        return sub

    def conv_w(self, cout, cin, kh, kw):
        fan_in = cin * kh * kw
        return (jax.random.normal(self._next(), (cout, cin, kh, kw), jnp.float32)
                * jnp.sqrt(2.0 / fan_in))

    def bn_folded(self, c):
        eps = 1e-5
        gamma = 1.0 + 0.1 * jax.random.normal(self._next(), (c,), jnp.float32)
        beta = 0.1 * jax.random.normal(self._next(), (c,), jnp.float32)
        mean = 0.1 * jax.random.normal(self._next(), (c,), jnp.float32)
        var = 1.0 + 0.1 * jnp.abs(jax.random.normal(self._next(), (c,), jnp.float32))
        scale = gamma / jnp.sqrt(var + eps)
        shift = beta - mean * scale
        return scale, shift

    def bias(self, c):
        return 0.1 * jax.random.normal(self._next(), (c,), jnp.float32)


def _conv_bn(gen, cin, cout, k):
    scale, shift = gen.bn_folded(cout)
    return {"w": gen.conv_w(cout, cin, k, k), "scale": scale, "shift": shift}


def _make_bottleneck(gen, inplanes, planes, stride, dilation, downsample):
    p = {"conv1": _conv_bn(gen, inplanes, planes, 1),
         "conv2": _conv_bn(gen, planes, planes, 3),
         "conv3": _conv_bn(gen, planes, planes * 4, 1),
         "stride": stride, "dilation": dilation}
    if downsample:
        p["down"] = _conv_bn(gen, inplanes, planes * 4, 1)
    return p


def _make_layer(gen, state, planes, blocks, stride, dilate):
    previous_dilation = state["dilation"]
    if dilate:
        state["dilation"] *= stride
        stride = 1
    downsample = (stride != 1) or (state["inplanes"] != planes * 4)
    layer = [_make_bottleneck(gen, state["inplanes"], planes, stride,
                              previous_dilation, downsample)]
    state["inplanes"] = planes * 4
    for _ in range(1, blocks):
        layer.append(_make_bottleneck(gen, state["inplanes"], planes, 1,
                                      state["dilation"], False))
    return layer


def make_params(seed=42, num_out=7):
    gen = ParamGen(seed)
    params = {"conv1": _conv_bn(gen, 3, 64, 7)}
    state = {"inplanes": 64, "dilation": 1}
    params["layer1"] = _make_layer(gen, state, 64, 3, 1, False)
    params["layer2"] = _make_layer(gen, state, 128, 4, 2, False)
    params["layer3"] = _make_layer(gen, state, 256, 6, 2, True)   # dilation -> 2
    params["layer4"] = _make_layer(gen, state, 512, 3, 2, True)   # dilation -> 4
    aspp = {"b0": _conv_bn(gen, 2048, 256, 1),
            "b1": _conv_bn(gen, 2048, 256, 3),      # rate 12
            "b2": _conv_bn(gen, 2048, 256, 3),      # rate 24
            "b3": _conv_bn(gen, 2048, 256, 3),      # rate 36
            "pool": _conv_bn(gen, 2048, 256, 1),
            "project": _conv_bn(gen, 5 * 256, 256, 1)}
    params["head"] = {"aspp": aspp,
                      "conv": _conv_bn(gen, 256, 256, 3),
                      "cls_w": gen.conv_w(21, 256, 1, 1),
                      "cls_b": gen.bias(21)}
    params["cls_w"] = gen.conv_w(num_out, 21, 1, 1)   # DLV3.classifier Conv2d(21, 7, 1)
    params["cls_b"] = gen.bias(num_out)
    return params


# ----------------------------------------------------------------------------
# Forward pass: DeepLabV3-ResNet50 -> ['out'] -> Conv2d(21, 7, 1)
# ----------------------------------------------------------------------------
def _cbr(x, p, stride=1, padding=0, dilation=1, residual=None, relu=True):
    return conv2d(x, p["w"], p["scale"], p["shift"], residual,
                  stride=stride, padding=padding, dilation=dilation, relu=relu)


def _bottleneck_fwd(x, p):
    out = _cbr(x, p["conv1"])
    out = _cbr(out, p["conv2"], stride=p["stride"],
               padding=p["dilation"], dilation=p["dilation"])
    if "down" in p:
        identity = _cbr(x, p["down"], stride=p["stride"], relu=False)
    else:
        identity = x
    # Residual add + ReLU fused into conv3's matmul epilogue.
    return _cbr(out, p["conv3"], residual=identity, relu=True)


def dlv3_forward(x, params):
    in_h, in_w = x.shape[2], x.shape[3]
    out = jnp.transpose(x, (0, 2, 3, 1))                      # NCHW -> NHWC once

    # ResNet50 backbone (output_stride = 8)
    out = _cbr(out, params["conv1"], stride=2, padding=3)
    out = maxpool_3x3_s2(out)
    for name in ("layer1", "layer2", "layer3", "layer4"):
        for blk in params[name]:
            out = _bottleneck_fwd(out, blk)

    # DeepLabHead: ASPP(2048, [12, 24, 36]) -> 3x3 conv -> classifiers
    h = params["head"]
    fh, fw = out.shape[1], out.shape[2]
    branches = [_cbr(out, h["aspp"]["b0"])]
    for name, rate in (("b1", 12), ("b2", 24), ("b3", 36)):
        branches.append(_cbr(out, h["aspp"][name], padding=rate, dilation=rate))
    gp = jnp.mean(out.astype(jnp.float32), axis=(1, 2), keepdims=True)
    gp = _cbr(gp, h["aspp"]["pool"])                          # AdaptiveAvgPool2d(1)
    branches.append(bilinear_resize(gp, fh, fw))
    cat = jnp.concatenate(branches, axis=-1)                  # [N, fh, fw, 1280]
    proj = _cbr(cat, h["aspp"]["project"])
    # Dropout(0.5) is identity in eval mode.
    y = _cbr(proj, h["conv"], padding=1)

    # The 256->21 head classifier, bilinear upsample and the 21->7 classifier
    # are all linear; 1x1 convs commute exactly with bilinear resize, so apply
    # the composed 256->7 classifier at feature resolution, then upsample.
    w1, b1 = h["cls_w"][:, :, 0, 0], h["cls_b"]               # 256 -> 21
    w2, b2 = params["cls_w"][:, :, 0, 0], params["cls_b"]     # 21 -> 7
    w_c = (w2 @ w1)[:, :, None, None]                         # [7, 256, 1, 1]
    b_c = b2 + w2 @ b1
    y = conv2d(y, w_c, jnp.ones((w_c.shape[0],), jnp.float32), b_c,
               relu=False, out_dtype=jnp.float32)             # [N, fh, fw, 7]
    y = bilinear_resize(y, in_h, in_w)                        # [N, H, W, 7]
    return jnp.transpose(y, (0, 3, 1, 2))                     # [N, 7, H, W]


if __name__ == "__main__":
    x = jax.random.normal(jax.random.PRNGKey(0), (2, 3, 32, 32), jnp.float32)
    params = make_params()
    out = dlv3_forward(x, params)
    out = jax.block_until_ready(out)
    assert out.shape == (2, 7, 32, 32), out.shape
    assert out.dtype == jnp.float32
    assert bool(jnp.all(jnp.isfinite(out)))
    print("KERNEL_OK")
</pallas_src>

<mosaic_0001>
module attributes {stable_mosaic.version = 11 : i64} {
  func.func @_mm_affine_kernel(%arg0: i32, %arg1: i32, %arg2: i32, %arg3: memref<256x147xbf16, #tpu.memory_space<vmem>>, %arg4: memref<147x64xbf16, #tpu.memory_space<vmem>>, %arg5: memref<1x64xf32, #tpu.memory_space<vmem>>, %arg6: memref<1x64xf32, #tpu.memory_space<vmem>>, %arg7: memref<256x64xbf16, #tpu.memory_space<vmem>>, %arg8: memref<256x64xf32, #tpu.memory_space<vmem>>) attributes {dimension_semantics = [#tpu.dimension_semantics<parallel>, #tpu.dimension_semantics<parallel>, #tpu.dimension_semantics<arbitrary>], iteration_bounds = array<i64: 2, 1, 1>, scalar_prefetch = 0 : i64, scratch_operands = 1 : i64, tpu.core_type = #tpu.core_type<tc>, window_params = [{transform_indices = @transform_0, window_bounds = array<i64: 256, 147>}, {transform_indices = @transform_1, window_bounds = array<i64: 147, 64>}, {transform_indices = @transform_2, window_bounds = array<i64: 1, 64>}, {transform_indices = @transform_3, window_bounds = array<i64: 1, 64>}, {transform_indices = @transform_4, window_bounds = array<i64: 256, 64>}]} {
    %c0_i32 = arith.constant 0 : i32
    %0 = arith.cmpi eq, %arg2, %c0_i32 : i32
    %1 = arith.extui %0 : i1 to i32
    %c0_i32_0 = arith.constant 0 : i32
    %2 = arith.cmpi ne, %1, %c0_i32_0 : i32
    scf.if %2 {
      %cst_10 = arith.constant 0.000000e+00 : f32
      %12 = vector.broadcast %cst_10 : f32 to vector<256x64xf32>
      %c0_11 = arith.constant 0 : index
      %c0_12 = arith.constant 0 : index
      %13 = vector.load %arg8[%c0_11, %c0_12] : memref<256x64xf32, #tpu.memory_space<vmem>>, vector<256x64xf32>
      tpu.vector_store %arg8[%c0_11, %c0_12], %12 {strides = array<i32>} : memref<256x64xf32, #tpu.memory_space<vmem>>, vector<256x64xf32>,
    } else {
    }
    %c0 = arith.constant 0 : index
    %c0_1 = arith.constant 0 : index
    %3 = vector.load %arg8[%c0, %c0_1] : memref<256x64xf32, #tpu.memory_space<vmem>>, vector<256x64xf32>
    %c0_2 = arith.constant 0 : index
    %c0_3 = arith.constant 0 : index
    %4 = vector.load %arg3[%c0_2, %c0_3] : memref<256x147xbf16, #tpu.memory_space<vmem>>, vector<256x147xbf16>
    %c0_4 = arith.constant 0 : index
    %c0_5 = arith.constant 0 : index
    %5 = vector.load %arg4[%c0_4, %c0_5] : memref<147x64xbf16, #tpu.memory_space<vmem>>, vector<147x64xbf16>
    %cst = arith.constant dense<0.000000e+00> : vector<256x64xf32>
    %6 = tpu.matmul %4, %5, %cst {dimension_numbers = #tpu.dot_dimension_numbers<[1], [0], [0], [1], [0, 0, 1, 1], [], []>} : vector<256x147xbf16>, vector<147x64xbf16>, vector<256x64xf32> -> vector<256x64xf32>
    %7 = arith.addf %3, %6 : vector<256x64xf32>
    %c0_6 = arith.constant 0 : index
    %c0_7 = arith.constant 0 : index
    %8 = vector.load %arg8[%c0_6, %c0_7] : memref<256x64xf32, #tpu.memory_space<vmem>>, vector<256x64xf32>
    tpu.vector_store %arg8[%c0_6, %c0_7], %7 {strides = array<i32>} : memref<256x64xf32, #tpu.memory_space<vmem>>, vector<256x64xf32>,
    %c0_i32_8 = arith.constant 0 : i32
    %9 = arith.cmpi eq, %arg2, %c0_i32_8 : i32
    %10 = arith.extui %9 : i1 to i32
    %c0_i32_9 = arith.constant 0 : i32
    %11 = arith.cmpi ne, %10, %c0_i32_9 : i32
    scf.if %11 {
      %c0_10 = arith.constant 0 : index
      %c0_11 = arith.constant 0 : index
      %12 = vector.load %arg8[%c0_10, %c0_11] : memref<256x64xf32, #tpu.memory_space<vmem>>, vector<256x64xf32>
      %c0_12 = arith.constant 0 : index
      %c0_13 = arith.constant 0 : index
      %13 = vector.load %arg5[%c0_12, %c0_13] : memref<1x64xf32, #tpu.memory_space<vmem>>, vector<1x64xf32>
      %14 = vector.broadcast %13 : vector<1x64xf32> to vector<256x64xf32>
      %15 = arith.mulf %12, %14 : vector<256x64xf32>
      %c0_14 = arith.constant 0 : index
      %c0_15 = arith.constant 0 : index
      %16 = vector.load %arg6[%c0_14, %c0_15] : memref<1x64xf32, #tpu.memory_space<vmem>>, vector<1x64xf32>
      %17 = vector.broadcast %16 : vector<1x64xf32> to vector<256x64xf32>
      %18 = arith.addf %15, %17 : vector<256x64xf32>
      %cst_16 = arith.constant 0.000000e+00 : f32
      %19 = vector.broadcast %cst_16 : f32 to vector<256x64xf32>
      %20 = arith.maximumf %18, %19 : vector<256x64xf32>
      %21 = arith.truncf %20 : vector<256x64xf32> to vector<256x64xbf16>
      %c0_17 = arith.constant 0 : index
      %c0_18 = arith.constant 0 : index
      %22 = vector.load %arg7[%c0_17, %c0_18] : memref<256x64xbf16, #tpu.memory_space<vmem>>, vector<256x64xbf16>
      tpu.vector_store %arg7[%c0_17, %c0_18], %21 {strides = array<i32>} : memref<256x64xbf16, #tpu.memory_space<vmem>>, vector<256x64xbf16>,
    } else {
    }
    return
  }
  func.func @transform_0(%arg0: i32, %arg1: i32, %arg2: i32) -> (i32, i32) {
    %c0_i32 = arith.constant 0 : i32
    return %arg0, %arg2 : i32, i32
  }
  func.func @transform_1(%arg0: i32, %arg1: i32, %arg2: i32) -> (i32, i32) {
    %c0_i32 = arith.constant 0 : i32
    return %arg2, %arg1 : i32, i32
  }
  func.func @transform_2(%arg0: i32, %arg1: i32, %arg2: i32) -> (i32, i32) {
    %c0_i32 = arith.constant 0 : i32
    %c0_i32_0 = arith.constant 0 : i32
    return %c0_i32, %arg1 : i32, i32
  }
  func.func @transform_3(%arg0: i32, %arg1: i32, %arg2: i32) -> (i32, i32) {
    %c0_i32 = arith.constant 0 : i32
    %c0_i32_0 = arith.constant 0 : i32
    return %c0_i32, %arg1 : i32, i32
  }
  func.func @transform_4(%arg0: i32, %arg1: i32, %arg2: i32) -> (i32, i32) {
    %c0_i32 = arith.constant 0 : i32
    return %arg0, %arg1 : i32, i32
  }
}

</mosaic_0001>

<bundles_post_ra>
// kernel: conv2d.1
= control target key start
LH: loop header
LB: loop body
LE: loop exit
PB: predicated region body
PF: predicated region fallthrough
CT: control target
= control target key end

     0   :  { %9 = vsyncpa [#allocation4], 0  ;;  %s2165_s0 = inlined_call_operand.vmem [shape: bf16[512,147], index: 0, kind: input, shape index: {}]   ;;  %s2166_s1 = inlined_call_operand.vmem [shape: bf16[147,64], index: 1, kind: input, shape index: {}]   ;;  %s2167_s2 = inlined_call_operand.vmem [shape: f32[1,64], index: 2, kind: input, shape index: {}]   ;;  %s2168_s3 = inlined_call_operand.vmem [shape: f32[1,64], index: 3, kind: input, shape index: {}]   ;;  %s2169_s4 = inlined_call_operand.hbm [shape: bf16[512,64], index: 4, kind: output, shape index: {}]  }
   0x1   :  { %11 = vsyncpa [#allocation4 + $0x1], 0  ;;  %s1738_s15 = smov 0   ;;  %s1740_s16 = smov 0  }
   0x2   :  { %s1742_s17 = smov 0   ;;  %s1744_s18 = smov 0  }
   0x3   :  { %s1746_s19 = smov 0   ;;  %s1748_s20 = smov 0  }
   0x4 LB: > { %s1348_s21 = sadd.s32 4294967295, %s1705_s20   ;;  %s1349_s22 = sadd.s32 4294967294, %s1705_s20   ;;  %s1705_s20 = sphi %s1748_s20, %s17_s20   ;;  %s1701_s19 = sphi %s1746_s19, %s2176_s19   ;;  %s1697_s18 = sphi %s1744_s18, %s2175_s18   ;;  %s1693_s17 = sphi %s1742_s17, %s2174_s17   ;;  %s1689_s16 = sphi %s1740_s16, %s2173_s16   ;;  %s1685_s15 = sphi %s1738_s15, %s2172_s15  }
   0x5   : > { %s36_s23 = sadd.s32 1, %s1701_s19  ;;  %s153_s24 = sadd.s32 1, %s1693_s17 }
   0x6   : > { %p38_p0 = scmp.ge.s32.totalorder %s36_s23, 2  ;;  %p163_p1 = scmp.ne.s32.totalorder %s1693_s17, %s1689_s16 }
   0x7   : > { %p164_p2 = scmp.eq.s32.totalorder %s1348_s21, 1  ;;  %p169_p3 = scmp.ne.s32.totalorder %s1689_s16, %s1685_s15 }
   0x8   : > { %s2178_s23 = smov (%p38_p0, %s36_s23), 0  ;;  %p170_p5 = scmp.eq.s32.totalorder %s1349_s22, 1 }
   0x9   : > { %p1778_p4 = por %p164_p2, %p163_p1  ;;  %s148_s26 = ssub.s32 %s1701_s19, %s2178_s23 }
   0xa   : > { %p1355_p6 = scmp.ge.s32.totalorder %s1705_s20, 1  ;;  %p151_p7 = scmp.eq.s32.totalorder %s148_s26, 0 }
   0xb   : > { %p1785_p8 = por %p170_p5, %p169_p3  ;;  %p227_p9 = scmp.lt.s32.totalorder %s1705_s20, 3 }
   0xc   : > { %s1791_s28 = scalar_select %p151_p7, %s1693_s17, %s153_s24  }
   0xd   : > { %p228_p10 = pnand %p1355_p6, %p227_p9 }
   0xe   : > { %s1357_s9 = sshll.u32 (!%p228_p10), %s1697_s18, 5  ;;  %s269_s22 = sand.u32 (!%p228_p10), 1, %s1689_s16  }
   0xf   : > { %231 = sbr.rel (%p228_p10) target bundleno = 347 (0x15b), region = 36  ;;  %p274_p11 = scmp.lt.s32.totalorder (!%p228_p10), %s1357_s9, 63 }
  0x10   : > { %s1356_s24 = sshll.u32 (!%p228_p10), %s269_s22, 7  ;;  %s1490_s29 = sshll.u32 (!%p228_p10), %s1697_s18, 11 }
  0x11   : > { %s1963_s26 = scalar_lea.vmem (!%p228_p10), [#allocation3], %s1356_s24  ;;  %s2110_s7 = scalar_lea.hbm (!%p228_p10), %s2169_s4, %s1490_s29 }
  0x12   : > { %s1225_s30 = sshll.u32 (!%p228_p10), %s1963_s26, 4  ;;  %s2120_s18 = scalar_lea.sflag (!%p228_p10), [#allocation4], %s269_s22  ;;  %s2112_s30 = int_to_ptr.vmem [resolvable:$true] %s1225_s30 }
  0x13   : > { %s1629_s8 = scalar_lea.vmem (!%p228_p10), %s2112_s30, 2048 }
  0x14   : > { %v1571_v0 = vld [vmem:[%s2166_s1 + $0x38] sm:$0xff]   ;;  %v1707_v1 = vmov 0   ;;  %v1572_v2 = vld [vmem:[%s2166_s1 + $0x30] sm:$0xff]   ;;  %v1573_v3 = vld [vmem:[%s2166_s1 + $0x28] sm:$0xff]   ;;  %s2180_s9 = smov (!%p274_p11, %s1357_s9), 63  ;;  %vm305_vm0 = vcmask 523264   ;;  %p1630_p12 = scmp.ne.s32.totalorder %s2112_s30, %s1629_s8 }
  0x15   : > { %678 = vmatprep.subr.bf16.mxu0 %v1707_v1  ;;  %1491 = vmatprep.subr.bf16.mxu1 %v1707_v1  ;;  %v1574_v4 = vld [vmem:[%s2166_s1 + $0x20] sm:$0xff]   ;;  %s1457_s12 = sshll.u32 %s2180_s9, 3  ;;  %v1708_v5 = vmov 0.0   ;;  %v1575_v6 = vld [vmem:[%s2166_s1 + $0x18] sm:$0xff]   ;;  %vm622_vm1 = vcmask 154624   ;;  %v1576_v9 = vld [vmem:[%s2166_s1 + $0x10] sm:$0xff]  }
  0x16   : > { %679 = vmatpush1.bf16.msra.mxu0 %v1571_v0  ;;  %1501 = vmatpush1.bf16.msra.mxu1 %v1571_v0  ;;  %306 = vst.msk [vmem:[#allocation2] sm:$0xff] %vm305_vm0, %v1708_v5  ;;  %307 = vst.msk [vmem:[#allocation2 + $0x8] sm:$0xff] %vm305_vm0, %v1708_v5  ;;  %s1854_s21 = scalar_lea.vmem %s2165_s0, %s1457_s12  ;;  %vm671_vm2 = vcmask 1040384   ;;  %v1577_v10 = vld [vmem:[%s2166_s1 + $0x8] sm:$0xff]   ;;  %vm672_vm3 = vcmask 1041408   ;;  %v1709_v11 = vmov 65535   ;;  %p1631_p13 = pnand %p1630_p12, %p1778_p4 }
  0x17   : > { %680 = vmatprep.subr.bf16.mxu0 %v1707_v1  ;;  %1492 = vmatprep.subr.bf16.mxu1 %v1707_v1  ;;  %308 = vst.msk [vmem:[#allocation2 + $0x10] sm:$0xff] %vm305_vm0, %v1708_v5  ;;  %309 = vst.msk [vmem:[#allocation2 + $0x18] sm:$0xff] %vm305_vm0, %v1708_v5  ;;  %v1583_v7 = vld [vmem:[%s1854_s21 + $0x4] ss:$8 sps:$4 sm:$0xff]   ;;  %v673_v12 = vsel %vm671_vm2, 4294967295, %v1709_v11  ;;  %vm1177_vm4 = vcmask 519168  }
  0x18   : > { %310 = vst.msk [vmem:[#allocation2 + $0x20] sm:$0xff] %vm305_vm0, %v1708_v5  ;;  %311 = vst.msk [vmem:[#allocation2 + $0x28] sm:$0xff] %vm305_vm0, %v1708_v5  ;;  %v1586_v8 = vld [vmem:[%s1854_s21 + $0x84] ss:$8 sps:$4 sm:$0xff]   ;;  %1402 = vmatprep.mubr.msk.bf16.mxu0 %vm622_vm1, %v1583_v7  ;;  %v674_v15 = vsel %vm672_vm3, %v673_v12, 0  ;;  %p1632_p0 = pneg %p1631_p13  ;;  %s1710_s9 = smov [#allocation3]  }
  0x19   : > { %312 = vst.msk [vmem:[#allocation2 + $0x30] sm:$0xff] %vm305_vm0, %v1708_v5  ;;  %313 = vst.msk [vmem:[#allocation2 + $0x38] sm:$0xff] %vm305_vm0, %v1708_v5  ;;  %1410 = vmatprep.mubr.msk.bf16.mxu1 %vm622_vm1, %v1586_v8  ;;  %v1578_v13 = vld [vmem:[%s2166_s1] sm:$0xff]   ;;  %v1579_v14 = vld [vmem:[%s2166_s1 + $0x48] ss:$0 sps:$4 sm:$0x33]  }
  0x1a   : > { %681 = vmatpush1.bf16.msra.mxu0 %v1572_v2  ;;  %1502 = vmatpush1.bf16.msra.mxu1 %v1572_v2  ;;  %314 = vst.msk [vmem:[#allocation2 + $0x40] sm:$0xff] %vm305_vm0, %v1708_v5  ;;  %315 = vst.msk [vmem:[#allocation2 + $0x48] sm:$0xff] %vm305_vm0, %v1708_v5  ;;  %v676_v16 = vand.u32 %v1579_v14, %v674_v15  ;;  %v1580_v17 = vld [vmem:[%s2166_s1 + $0x40] sm:$0xff]   ;;  %v1587_v20 = vld [vmem:[%s1854_s21 + $0x14] ss:$8 sps:$4 sm:$0xff]   ;;  %s1633_s10 = sshll.u32 %s1710_s9, 4  ;;  %s1634_s10 = int_to_ptr.vmem [resolvable:$false] %s1633_s10 }
  0x1b   : > { %682 = vmatprep.subr.bf16.mxu0 %v1707_v1  ;;  %1493 = vmatprep.subr.bf16.mxu1 %v1707_v1  ;;  %316 = vst.msk [vmem:[#allocation2 + $0x50] sm:$0xff] %vm305_vm0, %v1708_v5  ;;  %317 = vst.msk [vmem:[#allocation2 + $0x58] sm:$0xff] %vm305_vm0, %v1708_v5  ;;  %v1581_v18 = vld [vmem:[%s1854_s21] ss:$8 sps:$4 sm:$0xff]   ;;  %v1589_v21 = vld [vmem:[%s1854_s21 + $0x94] ss:$8 sps:$4 sm:$0xff]   ;;  %p1636_p1 = scmp.lt.s32.totalorder %s2112_s30, %s1634_s10 }
  0x1c   : > { %318 = vst.msk [vmem:[#allocation2 + $0x60] sm:$0xff] %vm305_vm0, %v1708_v5  ;;  %319 = vst.msk [vmem:[#allocation2 + $0x68] sm:$0xff] %vm305_vm0, %v1708_v5  ;;  %v1584_v19 = vld [vmem:[%s1854_s21 + $0x80] ss:$8 sps:$4 sm:$0xff]   ;;  %v1591_v22 = vld [vmem:[%s1854_s21 + $0x10] ss:$8 sps:$4 sm:$0xff]  }
  0x1d   : > { %320 = vst.msk [vmem:[#allocation2 + $0x70] sm:$0xff] %vm305_vm0, %v1708_v5  ;;  %321 = vst.msk [vmem:[#allocation2 + $0x78] sm:$0xff] %vm305_vm0, %v1708_v5  ;;  %v1592_v23 = vld [vmem:[%s1854_s21 + $0x90] ss:$8 sps:$4 sm:$0xff]   ;;  %v1593_v24 = vld [vmem:[%s1854_s21 + $0x24] ss:$8 sps:$4 sm:$0xff]  }
  0x1e   : > { %683 = vmatpush1.bf16.msra.mxu0 %v1573_v3  ;;  %1503 = vmatpush1.bf16.msra.mxu1 %v1573_v3  ;;  %322 = vst.msk [vmem:[#allocation2 + $0x80] sm:$0xff] %vm305_vm0, %v1708_v5  ;;  %323 = vst.msk [vmem:[#allocation2 + $0x88] sm:$0xff] %vm305_vm0, %v1708_v5  ;;  %v1595_v25 = vld [vmem:[%s1854_s21 + $0xa4] ss:$8 sps:$4 sm:$0xff]   ;;  %v1597_v26 = vld [vmem:[%s1854_s21 + $0x20] ss:$8 sps:$4 sm:$0xff]  }
  0x1f   : > { %684 = vmatprep.subr.bf16.mxu0 %v1707_v1  ;;  %1494 = vmatprep.subr.bf16.mxu1 %v1707_v1  ;;  %324 = vst.msk [vmem:[#allocation2 + $0x90] sm:$0xff] %vm305_vm0, %v1708_v5  ;;  %325 = vst.msk [vmem:[#allocation2 + $0x98] sm:$0xff] %vm305_vm0, %v1708_v5  ;;  %v1598_v27 = vld [vmem:[%s1854_s21 + $0xa0] ss:$8 sps:$4 sm:$0xff]   ;;  %v1599_v28 = vld [vmem:[%s1854_s21 + $0x34] ss:$8 sps:$4 sm:$0xff]  }
  0x20   : > { %326 = vst.msk [vmem:[#allocation2 + $0xa0] sm:$0xff] %vm305_vm0, %v1708_v5  ;;  %327 = vst.msk [vmem:[#allocation2 + $0xa8] sm:$0xff] %vm305_vm0, %v1708_v5  ;;  %v1601_v29 = vld [vmem:[%s1854_s21 + $0xb4] ss:$8 sps:$4 sm:$0xff]   ;;  %v1603_v30 = vld [vmem:[%s1854_s21 + $0x30] ss:$8 sps:$4 sm:$0xff]  }
  0x21   : > { %328 = vst.msk [vmem:[#allocation2 + $0xb0] sm:$0xff] %vm305_vm0, %v1708_v5  ;;  %329 = vst.msk [vmem:[#allocation2 + $0xb8] sm:$0xff] %vm305_vm0, %v1708_v5  ;;  %v1604_v31 = vld [vmem:[%s1854_s21 + $0xb0] ss:$8 sps:$4 sm:$0xff]   ;;  %v1605_v32 = vld [vmem:[%s1854_s21 + $0x44] ss:$8 sps:$4 sm:$0xff]  }
  0x22   : > { %330 = vst.msk [vmem:[#allocation2 + $0xc0] sm:$0xff] %vm305_vm0, %v1708_v5  ;;  %331 = vst.msk [vmem:[#allocation2 + $0xc8] sm:$0xff] %vm305_vm0, %v1708_v5  ;;  %685 = vmatpush1.bf16.msra.mxu0 %v1574_v4  ;;  %1504 = vmatpush1.bf16.msra.mxu1 %v1574_v4  ;;  %v1607_v33 = vld [vmem:[%s1854_s21 + $0xc4] ss:$8 sps:$4 sm:$0xff]   ;;  %v1609_v34 = vld [vmem:[%s1854_s21 + $0x40] ss:$8 sps:$4 sm:$0xff]  }
  0x23   : > { %332 = vst.msk [vmem:[#allocation2 + $0xd0] sm:$0xff] %vm305_vm0, %v1708_v5  ;;  %333 = vst.msk [vmem:[#allocation2 + $0xd8] sm:$0xff] %vm305_vm0, %v1708_v5  ;;  %686 = vmatprep.subr.bf16.mxu0 %v1707_v1  ;;  %1495 = vmatprep.subr.bf16.mxu1 %v1707_v1  ;;  %v1610_v35 = vld [vmem:[%s1854_s21 + $0xc0] ss:$8 sps:$4 sm:$0xff]   ;;  %v1611_v36 = vld [vmem:[%s1854_s21 + $0x54] ss:$8 sps:$4 sm:$0xff]  }
  0x24   : > { %334 = vst.msk [vmem:[#allocation2 + $0xe0] sm:$0xff] %vm305_vm0, %v1708_v5  ;;  %335 = vst.msk [vmem:[#allocation2 + $0xe8] sm:$0xff] %vm305_vm0, %v1708_v5  ;;  %v1613_v37 = vld [vmem:[%s1854_s21 + $0xd4] ss:$8 sps:$4 sm:$0xff]   ;;  %v1615_v38 = vld [vmem:[%s1854_s21 + $0x50] ss:$8 sps:$4 sm:$0xff]  }
  0x25   : > { %336 = vst.msk [vmem:[#allocation2 + $0xf0] sm:$0xff] %vm305_vm0, %v1708_v5  ;;  %337 = vst.msk [vmem:[#allocation2 + $0xf8] sm:$0xff] %vm305_vm0, %v1708_v5  ;;  %v1616_v39 = vld [vmem:[%s1854_s21 + $0xd0] ss:$8 sps:$4 sm:$0xff]   ;;  %v1617_v40 = vld [vmem:[%s1854_s21 + $0x64] ss:$8 sps:$4 sm:$0xff]  }
  0x26   : > { %687 = vmatpush1.bf16.msra.mxu0 %v1575_v6  ;;  %1505 = vmatpush1.bf16.msra.mxu1 %v1575_v6  ;;  %v1619_v41 = vld [vmem:[%s1854_s21 + $0xe4] ss:$8 sps:$4 sm:$0xff]   ;;  %v1621_v42 = vld [vmem:[%s1854_s21 + $0x60] ss:$8 sps:$4 sm:$0xff]   ;;  %v1623_v44 = vld [vmem:[%s1854_s21 + $0x74] ss:$8 sps:$4 sm:$0xff]  }
  0x27   : > { %688 = vmatprep.subr.bf16.mxu0 %v1707_v1  ;;  %1496 = vmatprep.subr.bf16.mxu1 %v1707_v1  ;;  %v1622_v43 = vld [vmem:[%s1854_s21 + $0xe0] ss:$8 sps:$4 sm:$0xff]   ;;  %v1625_v45 = vld [vmem:[%s1854_s21 + $0xf4] ss:$8 sps:$4 sm:$0xff]   ;;  %v1627_v46 = vld [vmem:[%s1854_s21 + $0x70] ss:$8 sps:$4 sm:$0xff]  }
  0x28   : > { %v1628_v47 = vld [vmem:[%s1854_s21 + $0xf0] ss:$8 sps:$4 sm:$0xff]   ;;  %v338_v48 = vld [vmem:[#allocation2] sm:$0xff]  ;;  %v339_v56 = vld [vmem:[#allocation2 + $0x8] sm:$0xff]  ;;  %s1635_s11 = scalar_lea.vmem %s1634_s10, 4096 }
  0x29   : > { %v354_v49 = vld [vmem:[#allocation2 + $0x80] sm:$0xff]  ;;  %v355_v57 = vld [vmem:[#allocation2 + $0x88] sm:$0xff]  ;;  %v340_v0 = vld [vmem:[#allocation2 + $0x10] sm:$0xff]  ;;  %p1637_p2 = scmp.lt.s32.totalorder %s1635_s11, %s1629_s8 }
  0x2a   : > { %689 = vmatpush1.bf16.msra.mxu0 %v1576_v9  ;;  %1506 = vmatpush1.bf16.msra.mxu1 %v1576_v9  ;;  %v1941_v2 = vld [vmem:[%s2167_s2] ss:$0 sm:$0xff]  ;;  %v341_v8 = vld [vmem:[#allocation2 + $0x18] sm:$0xff] }
  0x2b   : > { %690 = vmatprep.subr.bf16.mxu0 %v1707_v1  ;;  %1497 = vmatprep.subr.bf16.mxu1 %v1707_v1  ;;  %v1946_v5 = vld [vmem:[%s2168_s3] ss:$0 sm:$0xff]  ;;  %p1638_p3 = por %p1637_p2, %p1636_p1 }
  0x2d   : > { %p1639_p5 = pnand %p1638_p3, %p1632_p0 }
  0x2e   : > { %691 = vmatpush1.bf16.msra.mxu0 %v1577_v10  ;;  %1507 = vmatpush1.bf16.msra.mxu1 %v1577_v10 }
  0x2f   : > { %692 = vmatprep.subr.bf16.mxu0 %v1707_v1  ;;  %1498 = vmatprep.subr.bf16.mxu1 %v1707_v1 }
  0x32   : > { %693 = vmatpush1.bf16.msra.mxu0 %v1578_v13  ;;  %1508 = vmatpush1.bf16.msra.mxu1 %v1578_v13  ;;  %v357_v13 = vld [vmem:[#allocation2 + $0x98] sm:$0xff] }
  0x33   : > { %706 = vmatprep.subr.bf16.mxu0 %v1707_v1  ;;  %1499 = vmatprep.subr.bf16.mxu1 %v1707_v1 }
  0x36   : > { %707 = vmatpush2.bf16.msra.mxu0 %v676_v16  ;;  %1509 = vmatpush2.bf16.msra.mxu1 %v676_v16 }
  0x37   : > { %708 = vmatprep.subr.bf16.mxu0 %v1707_v1  ;;  %1500 = vmatprep.subr.bf16.mxu1 %v1707_v1  ;;  %v356_v1 = vld [vmem:[#allocation2 + $0x90] sm:$0xff] }
  0x3a   : > { %709 = vmatpush2.bf16.msra.mxu0 %v1580_v17  ;;  %1510 = vmatpush2.bf16.msra.mxu1 %v1580_v17 }
  0x3d   : > { %711 = vmatmul.mubr.bf16.vlgmr.msra.gmra.mxu0 %v1581_v18  ;;  %775 = vmatmul.mubr.bf16.vlgmr.msra.gmra.mxu1 %v1584_v19 }
  0x3e   : > { %1403 = vmatprep.mubr.msk.bf16.mxu0 %vm622_vm1, %v1587_v20  ;;  %1411 = vmatprep.mubr.msk.bf16.mxu1 %vm622_vm1, %v1589_v21 }
  0x45   : > { %719 = vmatmul.mubr.bf16.gmra.mxu0 %v1591_v22  ;;  %783 = vmatmul.mubr.bf16.gmra.mxu1 %v1592_v23 }
  0x46   : > { %1404 = vmatprep.mubr.msk.bf16.mxu0 %vm622_vm1, %v1593_v24  ;;  %1412 = vmatprep.mubr.msk.bf16.mxu1 %vm622_vm1, %v1595_v25 }
  0x4d   : > { %727 = vmatmul.mubr.bf16.gmra.mxu0 %v1597_v26  ;;  %791 = vmatmul.mubr.bf16.gmra.mxu1 %v1598_v27 }
  0x4e   : > { %1405 = vmatprep.mubr.msk.bf16.mxu0 %vm622_vm1, %v1599_v28  ;;  %1413 = vmatprep.mubr.msk.bf16.mxu1 %vm622_vm1, %v1601_v29 }
  0x55   : > { %735 = vmatmul.mubr.bf16.gmra.mxu0 %v1603_v30  ;;  %799 = vmatmul.mubr.bf16.gmra.mxu1 %v1604_v31  ;;  %v342_v30 = vld [vmem:[#allocation2 + $0x20] sm:$0xff] }
  0x56   : > { %1406 = vmatprep.mubr.msk.bf16.mxu0 %vm622_vm1, %v1605_v32  ;;  %1414 = vmatprep.mubr.msk.bf16.mxu1 %vm622_vm1, %v1607_v33  ;;  %v358_v31 = vld [vmem:[#allocation2 + $0xa0] sm:$0xff] }
  0x5d   : > { %743 = vmatmul.mubr.bf16.gmra.mxu0 %v1609_v34  ;;  %807 = vmatmul.mubr.bf16.gmra.mxu1 %v1610_v35 }
  0x5e   : > { %1407 = vmatprep.mubr.msk.bf16.mxu0 %vm622_vm1, %v1611_v36  ;;  %1415 = vmatprep.mubr.msk.bf16.mxu1 %vm622_vm1, %v1613_v37 }
  0x65   : > { %751 = vmatmul.mubr.bf16.gmra.mxu0 %v1615_v38  ;;  %815 = vmatmul.mubr.bf16.gmra.mxu1 %v1616_v39 }
  0x66   : > { %1408 = vmatprep.mubr.msk.bf16.mxu0 %vm622_vm1, %v1617_v40  ;;  %1416 = vmatprep.mubr.msk.bf16.mxu1 %vm622_vm1, %v1619_v41 }
  0x6d   : > { %759 = vmatmul.mubr.bf16.gmra.mxu0 %v1621_v42  ;;  %823 = vmatmul.mubr.bf16.gmra.mxu1 %v1622_v43 }
  0x6e   : > { %1409 = vmatprep.mubr.msk.bf16.mxu0 %vm622_vm1, %v1623_v44  ;;  %1417 = vmatprep.mubr.msk.bf16.mxu1 %vm622_vm1, %v1625_v45 }
  0x75   : > { %767 = vmatmul.mubr.bf16.gmra.mxu0 %v1627_v46  ;;  %831 = vmatmul.mubr.bf16.gmra.mxu1 %v1628_v47 }
  0xfd   : > { %v712_v50 = vpop.f32.mrf.mxu0  ;;  %v776_v51 = vpop.f32.mrf.mxu1 }
  0xfe   : > { %v839_v52 = vadd.f32 %v712_v50, %v338_v48  ;;  %v855_v53 = vadd.f32 %v776_v51, %v354_v49  ;;  %v343_v48 = vld [vmem:[#allocation2 + $0x28] sm:$0xff] }
  0xff   : > { %v714_v54 = vpop.f32.mrf.mxu0  ;;  %v778_v55 = vpop.f32.mrf.mxu1  ;;  %v359_v49 = vld [vmem:[#allocation2 + $0xa8] sm:$0xff] }
 0x100   : > { %872 = vst.msk [vmem:[#allocation2] sm:$0xff] %vm305_vm0, %v839_v52  ;;  %888 = vst.msk [vmem:[#allocation2 + $0x80] sm:$0xff] %vm305_vm0, %v855_v53 }
 0x101   : > { %v715_v58 = vpop.f32.mrf.mxu0  ;;  %v779_v59 = vpop.f32.mrf.mxu1 }
 0x102   : > { %v840_v60 = vadd.f32 %v715_v58, %v339_v56  ;;  %v856_v61 = vadd.f32 %v779_v59, %v355_v57 }
 0x103   : > { %v717_v62 = vpop.f32.mrf.mxu0  ;;  %v781_v63 = vpop.f32.mrf.mxu1 }
 0x104   : > { %873 = vst.msk [vmem:[#allocation2 + $0x8] sm:$0xff] %vm305_vm0, %v840_v60  ;;  %889 = vst.msk [vmem:[#allocation2 + $0x88] sm:$0xff] %vm305_vm0, %v856_v61 }
 0x105   : > { %v720_v3 = vpop.f32.mrf.mxu0  ;;  %v784_v4 = vpop.f32.mrf.mxu1 }
 0x106   : > { %v841_v6 = vadd.f32 %v720_v3, %v340_v0  ;;  %v857_v7 = vadd.f32 %v784_v4, %v356_v1  ;;  %v344_v3 = vld [vmem:[#allocation2 + $0x30] sm:$0xff] }
 0x107   : > { %v907_v9 = vld [vmem:[#allocation2] sm:$0xff]  ;;  %v722_v11 = vpop.f32.mrf.mxu0  ;;  %v786_v12 = vpop.f32.mrf.mxu1  ;;  %v360_v4 = vld [vmem:[#allocation2 + $0xb0] sm:$0xff] }
 0x108   : > { %v923_v10 = vld [vmem:[#allocation2 + $0x80] sm:$0xff]  ;;  %v946_v14 = vmul.f32 %v1941_v2, %v907_v9  ;;  %874 = vst.msk [vmem:[#allocation2 + $0x10] sm:$0xff] %vm305_vm0, %v841_v6  ;;  %890 = vst.msk [vmem:[#allocation2 + $0x90] sm:$0xff] %vm305_vm0, %v857_v7 }
 0x109   : > { %v962_v15 = vmul.f32 %v1941_v2, %v923_v10  ;;  %v723_v16 = vpop.f32.mrf.mxu0  ;;  %v787_v17 = vpop.f32.mrf.mxu1 }
 0x10a   : > { %v985_v18 = vadd.f32 %v1946_v5, %v946_v14  ;;  %v842_v20 = vadd.f32 %v723_v16, %v341_v8  ;;  %v858_v21 = vadd.f32 %v787_v17, %v357_v13  ;;  %v345_v16 = vld [vmem:[#allocation2 + $0x38] sm:$0xff] }
 0x10b   : > { %v1001_v19 = vadd.f32 %v1946_v5, %v962_v15  ;;  %v908_v22 = vld [vmem:[#allocation2 + $0x8] sm:$0xff]  ;;  %v725_v24 = vpop.f32.mrf.mxu0  ;;  %v789_v25 = vpop.f32.mrf.mxu1  ;;  %v361_v17 = vld [vmem:[#allocation2 + $0xb8] sm:$0xff] }
 0x10c   : > { %v924_v23 = vld [vmem:[#allocation2 + $0x88] sm:$0xff]  ;;  %v1017_v26 = vmax.f32 %v985_v18, 0.0  ;;  %v947_v28 = vmul.f32 %v1941_v2, %v908_v22  ;;  %875 = vst.msk [vmem:[#allocation2 + $0x18] sm:$0xff] %vm305_vm0, %v842_v20  ;;  %891 = vst.msk [vmem:[#allocation2 + $0x98] sm:$0xff] %vm305_vm0, %v858_v21 }
 0x10d   : > { %v1033_v27 = vmax.f32 %v1001_v19, 0.0  ;;  %v963_v29 = vmul.f32 %v1941_v2, %v924_v23  ;;  %v728_v32 = vpop.f32.mrf.mxu0  ;;  %v792_v33 = vpop.f32.mrf.mxu1 }
 0x10e   : > { %v1458_v34 = vpack.c.bf16 %v1017_v26, %v1017_v26  ;;  %v986_v36 = vadd.f32 %v1946_v5, %v947_v28  ;;  %v843_v40 = vadd.f32 %v728_v32, %v342_v30  ;;  %v859_v41 = vadd.f32 %v792_v33, %v358_v31 }
 0x10f   : > { %v1474_v35 = vpack.c.bf16 %v1033_v27, %v1033_v27  ;;  %v1002_v37 = vadd.f32 %v1946_v5, %v963_v29  ;;  %v909_v38 = vld [vmem:[#allocation2 + $0x10] sm:$0xff]  ;;  %v730_v42 = vpop.f32.mrf.mxu0  ;;  %v794_v43 = vpop.f32.mrf.mxu1 }
 0x110   : > { %v925_v39 = vld [vmem:[#allocation2 + $0x90] sm:$0xff]  ;;  %1178 = vst.msk [vmem:[%s1963_s26] sm:$0xf] %vm1177_vm4, %v1458_v34  ;;  %v1018_v44 = vmax.f32 %v986_v36, 0.0  ;;  %v948_v46 = vmul.f32 %v1941_v2, %v909_v38  ;;  %v346_v34 = vld [vmem:[#allocation2 + $0x40] sm:$0xff] }
 0x111   : > { %1194 = vst.msk [vmem:[%s1963_s26 + $0x40] sm:$0xf] %vm1177_vm4, %v1474_v35  ;;  %v1034_v45 = vmax.f32 %v1002_v37, 0.0  ;;  %v964_v47 = vmul.f32 %v1941_v2, %v925_v39  ;;  %v731_v50 = vpop.f32.mrf.mxu0  ;;  %v795_v51 = vpop.f32.mrf.mxu1  ;;  %v362_v35 = vld [vmem:[#allocation2 + $0xc0] sm:$0xff] }
 0x112   : > { %876 = vst.msk [vmem:[#allocation2 + $0x20] sm:$0xff] %vm305_vm0, %v843_v40  ;;  %892 = vst.msk [vmem:[#allocation2 + $0xa0] sm:$0xff] %vm305_vm0, %v859_v41  ;;  %v1459_v52 = vpack.c.bf16 %v1018_v44, %v1018_v44  ;;  %v987_v54 = vadd.f32 %v1946_v5, %v948_v46  ;;  %v844_v58 = vadd.f32 %v731_v50, %v343_v48 }
 0x113   : > { %v1475_v53 = vpack.c.bf16 %v1034_v45, %v1034_v45  ;;  %v1003_v55 = vadd.f32 %v1946_v5, %v964_v47  ;;  %v910_v56 = vld [vmem:[#allocation2 + $0x18] sm:$0xff]  ;;  %v860_v59 = vadd.f32 %v795_v51, %v359_v49  ;;  %v733_v60 = vpop.f32.mrf.mxu0  ;;  %v797_v61 = vpop.f32.mrf.mxu1 }
 0x114   : > { %v926_v57 = vld [vmem:[#allocation2 + $0x98] sm:$0xff]  ;;  %1179 = vst.msk [vmem:[%s1963_s26 + $0x4] sm:$0xf] %vm1177_vm4, %v1459_v52  ;;  %v1019_v62 = vmax.f32 %v987_v54, 0.0  ;;  %v949_v0 = vmul.f32 %v1941_v2, %v910_v56  ;;  %v347_v52 = vld [vmem:[#allocation2 + $0x48] sm:$0xff] }
 0x115   : > { %1195 = vst.msk [vmem:[%s1963_s26 + $0x44] sm:$0xf] %vm1177_vm4, %v1475_v53  ;;  %v1035_v63 = vmax.f32 %v1003_v55, 0.0  ;;  %v965_v1 = vmul.f32 %v1941_v2, %v926_v57  ;;  %v736_v6 = vpop.f32.mrf.mxu0  ;;  %v800_v7 = vpop.f32.mrf.mxu1  ;;  %v363_v53 = vld [vmem:[#allocation2 + $0xc8] sm:$0xff] }
 0x116   : > { %877 = vst.msk [vmem:[#allocation2 + $0x28] sm:$0xff] %vm305_vm0, %v844_v58  ;;  %893 = vst.msk [vmem:[#allocation2 + $0xa8] sm:$0xff] %vm305_vm0, %v860_v59  ;;  %v1460_v8 = vpack.c.bf16 %v1019_v62, %v1019_v62  ;;  %v988_v10 = vadd.f32 %v1946_v5, %v949_v0  ;;  %v845_v12 = vadd.f32 %v736_v6, %v344_v3  ;;  %v348_v0 = vld [vmem:[#allocation2 + $0x50] sm:$0xff] }
 0x117   : > { %v1476_v9 = vpack.c.bf16 %v1035_v63, %v1035_v63  ;;  %v1004_v11 = vadd.f32 %v1946_v5, %v965_v1  ;;  %v861_v13 = vadd.f32 %v800_v7, %v360_v4  ;;  %v738_v14 = vpop.f32.mrf.mxu0  ;;  %v802_v15 = vpop.f32.mrf.mxu1 }
 0x118   : > { %1180 = vst.msk [vmem:[%s1963_s26 + $0x8] sm:$0xf] %vm1177_vm4, %v1460_v8  ;;  %v1020_v18 = vmax.f32 %v988_v10, 0.0 }
 0x119   : > { %1196 = vst.msk [vmem:[%s1963_s26 + $0x48] sm:$0xf] %vm1177_vm4, %v1476_v9  ;;  %v1036_v19 = vmax.f32 %v1004_v11, 0.0  ;;  %v911_v20 = vld [vmem:[#allocation2 + $0x20] sm:$0xff]  ;;  %v739_v24 = vpop.f32.mrf.mxu0  ;;  %v803_v25 = vpop.f32.mrf.mxu1  ;;  %v364_v11 = vld [vmem:[#allocation2 + $0xd0] sm:$0xff] }
 0x11a   : > { %v927_v21 = vld [vmem:[#allocation2 + $0xa0] sm:$0xff]  ;;  %v950_v22 = vmul.f32 %v1941_v2, %v911_v20  ;;  %878 = vst.msk [vmem:[#allocation2 + $0x30] sm:$0xff] %vm305_vm0, %v845_v12  ;;  %894 = vst.msk [vmem:[#allocation2 + $0xb0] sm:$0xff] %vm305_vm0, %v861_v13  ;;  %v1461_v26 = vpack.c.bf16 %v1020_v18, %v1020_v18  ;;  %v846_v28 = vadd.f32 %v739_v24, %v345_v16 }
 0x11b   : > { %v966_v23 = vmul.f32 %v1941_v2, %v927_v21  ;;  %v1477_v27 = vpack.c.bf16 %v1036_v19, %v1036_v19  ;;  %v862_v29 = vadd.f32 %v803_v25, %v361_v17  ;;  %v741_v32 = vpop.f32.mrf.mxu0  ;;  %v805_v33 = vpop.f32.mrf.mxu1 }
 0x11c   : > { %v989_v30 = vadd.f32 %v1946_v5, %v950_v22  ;;  %1181 = vst.msk [vmem:[%s1963_s26 + $0xc] sm:$0xf] %vm1177_vm4, %v1461_v26  ;;  %v349_v32 = vld [vmem:[#allocation2 + $0x58] sm:$0xff] }
 0x11d   : > { %v1005_v31 = vadd.f32 %v1946_v5, %v966_v23  ;;  %1197 = vst.msk [vmem:[%s1963_s26 + $0x4c] sm:$0xf] %vm1177_vm4, %v1477_v27  ;;  %v912_v36 = vld [vmem:[#allocation2 + $0x28] sm:$0xff]  ;;  %v744_v42 = vpop.f32.mrf.mxu0  ;;  %v808_v43 = vpop.f32.mrf.mxu1  ;;  %v365_v33 = vld [vmem:[#allocation2 + $0xd8] sm:$0xff] }
 0x11e   : > { %v928_v37 = vld [vmem:[#allocation2 + $0xa8] sm:$0xff]  ;;  %879 = vst.msk [vmem:[#allocation2 + $0x38] sm:$0xff] %vm305_vm0, %v846_v28  ;;  %895 = vst.msk [vmem:[#allocation2 + $0xb8] sm:$0xff] %vm305_vm0, %v862_v29  ;;  %v1021_v38 = vmax.f32 %v989_v30, 0.0  ;;  %v951_v40 = vmul.f32 %v1941_v2, %v912_v36  ;;  %v847_v44 = vadd.f32 %v744_v42, %v346_v34  ;;  %v863_v45 = vadd.f32 %v808_v43, %v362_v35 }
 0x11f   : > { %v1037_v39 = vmax.f32 %v1005_v31, 0.0  ;;  %v967_v41 = vmul.f32 %v1941_v2, %v928_v37  ;;  %v746_v50 = vpop.f32.mrf.mxu0  ;;  %v810_v51 = vpop.f32.mrf.mxu1 }
 0x120   : > { %v1462_v46 = vpack.c.bf16 %v1021_v38, %v1021_v38  ;;  %v990_v48 = vadd.f32 %v1946_v5, %v951_v40  ;;  %880 = vst.msk [vmem:[#allocation2 + $0x40] sm:$0xff] %vm305_vm0, %v847_v44  ;;  %896 = vst.msk [vmem:[#allocation2 + $0xc0] sm:$0xff] %vm305_vm0, %v863_v45  ;;  %v350_v50 = vld [vmem:[#allocation2 + $0x60] sm:$0xff] }
 0x121   : > { %v1478_v47 = vpack.c.bf16 %v1037_v39, %v1037_v39  ;;  %v1006_v49 = vadd.f32 %v1946_v5, %v967_v41  ;;  %v913_v54 = vld [vmem:[#allocation2 + $0x30] sm:$0xff]  ;;  %v747_v60 = vpop.f32.mrf.mxu0  ;;  %v811_v61 = vpop.f32.mrf.mxu1  ;;  %v366_v51 = vld [vmem:[#allocation2 + $0xe0] sm:$0xff] }
 0x122   : > { %v929_v55 = vld [vmem:[#allocation2 + $0xb0] sm:$0xff]  ;;  %1182 = vst.msk [vmem:[%s1963_s26 + $0x10] sm:$0xf] %vm1177_vm4, %v1462_v46  ;;  %v1022_v56 = vmax.f32 %v990_v48, 0.0  ;;  %v952_v58 = vmul.f32 %v1941_v2, %v913_v54  ;;  %v848_v62 = vadd.f32 %v747_v60, %v347_v52  ;;  %v864_v63 = vadd.f32 %v811_v61, %v363_v53 }
 0x123   : > { %1198 = vst.msk [vmem:[%s1963_s26 + $0x50] sm:$0xf] %vm1177_vm4, %v1478_v47  ;;  %v1038_v57 = vmax.f32 %v1006_v49, 0.0  ;;  %v968_v59 = vmul.f32 %v1941_v2, %v929_v55  ;;  %v749_v9 = vpop.f32.mrf.mxu0  ;;  %v813_v10 = vpop.f32.mrf.mxu1 }
 0x124   : > { %v1463_v1 = vpack.c.bf16 %v1022_v56, %v1022_v56  ;;  %v991_v4 = vadd.f32 %v1946_v5, %v952_v58  ;;  %881 = vst.msk [vmem:[#allocation2 + $0x48] sm:$0xff] %vm305_vm0, %v848_v62  ;;  %897 = vst.msk [vmem:[#allocation2 + $0xc8] sm:$0xff] %vm305_vm0, %v864_v63 }
 0x125   : > { %v1479_v3 = vpack.c.bf16 %v1038_v57, %v1038_v57  ;;  %v1007_v6 = vadd.f32 %v1946_v5, %v968_v59  ;;  %v914_v7 = vld [vmem:[#allocation2 + $0x38] sm:$0xff]  ;;  %v752_v16 = vpop.f32.mrf.mxu0  ;;  %v816_v17 = vpop.f32.mrf.mxu1 }
 0x126   : > { %v930_v8 = vld [vmem:[#allocation2 + $0xb8] sm:$0xff]  ;;  %v953_v12 = vmul.f32 %v1941_v2, %v914_v7  ;;  %1183 = vst.msk [vmem:[%s1963_s26 + $0x14] sm:$0xf] %vm1177_vm4, %v1463_v1  ;;  %v1023_v14 = vmax.f32 %v991_v4, 0.0  ;;  %v849_v20 = vadd.f32 %v752_v16, %v348_v0  ;;  %v865_v21 = vadd.f32 %v816_v17, %v364_v11  ;;  %v367_v7 = vld [vmem:[#allocation2 + $0xe8] sm:$0xff] }
 0x127   : > { %v969_v13 = vmul.f32 %v1941_v2, %v930_v8  ;;  %1199 = vst.msk [vmem:[%s1963_s26 + $0x54] sm:$0xf] %vm1177_vm4, %v1479_v3  ;;  %v1039_v15 = vmax.f32 %v1007_v6, 0.0  ;;  %v915_v24 = vld [vmem:[#allocation2 + $0x40] sm:$0xff]  ;;  %v754_v26 = vpop.f32.mrf.mxu0  ;;  %v818_v27 = vpop.f32.mrf.mxu1  ;;  %v351_v6 = vld [vmem:[#allocation2 + $0x68] sm:$0xff] }
 0x128   : > { %v992_v18 = vadd.f32 %v1946_v5, %v953_v12  ;;  %v1464_v22 = vpack.c.bf16 %v1023_v14, %v1023_v14  ;;  %v931_v25 = vld [vmem:[#allocation2 + $0xc0] sm:$0xff]  ;;  %v954_v30 = vmul.f32 %v1941_v2, %v915_v24  ;;  %882 = vst.msk [vmem:[#allocation2 + $0x50] sm:$0xff] %vm305_vm0, %v849_v20  ;;  %898 = vst.msk [vmem:[#allocation2 + $0xd0] sm:$0xff] %vm305_vm0, %v865_v21 }
 0x129   : > { %v1008_v19 = vadd.f32 %v1946_v5, %v969_v13  ;;  %v1480_v23 = vpack.c.bf16 %v1039_v15, %v1039_v15  ;;  %v970_v31 = vmul.f32 %v1941_v2, %v931_v25  ;;  %v755_v34 = vpop.f32.mrf.mxu0  ;;  %v819_v35 = vpop.f32.mrf.mxu1 }
 0x12a   : > { %v1024_v28 = vmax.f32 %v992_v18, 0.0  ;;  %1184 = vst.msk [vmem:[%s1963_s26 + $0x18] sm:$0xf] %vm1177_vm4, %v1464_v22  ;;  %v993_v38 = vadd.f32 %v1946_v5, %v954_v30  ;;  %v850_v42 = vadd.f32 %v755_v34, %v349_v32  ;;  %v866_v43 = vadd.f32 %v819_v35, %v365_v33  ;;  %v352_v18 = vld [vmem:[#allocation2 + $0x70] sm:$0xff] }
 0x12b   : > { %v1040_v29 = vmax.f32 %v1008_v19, 0.0  ;;  %1200 = vst.msk [vmem:[%s1963_s26 + $0x58] sm:$0xf] %vm1177_vm4, %v1480_v23  ;;  %v1009_v39 = vadd.f32 %v1946_v5, %v970_v31  ;;  %v916_v40 = vld [vmem:[#allocation2 + $0x48] sm:$0xff]  ;;  %v757_v44 = vpop.f32.mrf.mxu0  ;;  %v821_v45 = vpop.f32.mrf.mxu1  ;;  %v368_v19 = vld [vmem:[#allocation2 + $0xf0] sm:$0xff] }
 0x12c   : > { %v1465_v36 = vpack.c.bf16 %v1024_v28, %v1024_v28  ;;  %v932_v41 = vld [vmem:[#allocation2 + $0xc8] sm:$0xff]  ;;  %v1025_v46 = vmax.f32 %v993_v38, 0.0  ;;  %v955_v48 = vmul.f32 %v1941_v2, %v916_v40  ;;  %883 = vst.msk [vmem:[#allocation2 + $0x58] sm:$0xff] %vm305_vm0, %v850_v42  ;;  %899 = vst.msk [vmem:[#allocation2 + $0xd8] sm:$0xff] %vm305_vm0, %v866_v43 }
 0x12d   : > { %v1481_v37 = vpack.c.bf16 %v1040_v29, %v1040_v29  ;;  %v1041_v47 = vmax.f32 %v1009_v39, 0.0  ;;  %v971_v49 = vmul.f32 %v1941_v2, %v932_v41  ;;  %v760_v52 = vpop.f32.mrf.mxu0  ;;  %v824_v53 = vpop.f32.mrf.mxu1 }
 0x12e   : > { %1185 = vst.msk [vmem:[%s1963_s26 + $0x1c] sm:$0xf] %vm1177_vm4, %v1465_v36  ;;  %v1466_v54 = vpack.c.bf16 %v1025_v46, %v1025_v46  ;;  %v994_v56 = vadd.f32 %v1946_v5, %v955_v48  ;;  %v851_v60 = vadd.f32 %v760_v52, %v350_v50  ;;  %v867_v61 = vadd.f32 %v824_v53, %v366_v51  ;;  %v353_v36 = vld [vmem:[#allocation2 + $0x78] sm:$0xff] }
 0x12f   : > { %1201 = vst.msk [vmem:[%s1963_s26 + $0x5c] sm:$0xf] %vm1177_vm4, %v1481_v37  ;;  %v1482_v55 = vpack.c.bf16 %v1041_v47, %v1041_v47  ;;  %v1010_v57 = vadd.f32 %v1946_v5, %v971_v49  ;;  %v917_v58 = vld [vmem:[#allocation2 + $0x50] sm:$0xff]  ;;  %v762_v62 = vpop.f32.mrf.mxu0  ;;  %v826_v63 = vpop.f32.mrf.mxu1  ;;  %v369_v37 = vld [vmem:[#allocation2 + $0xf8] sm:$0xff] }
 0x130   : > { %v933_v59 = vld [vmem:[#allocation2 + $0xd0] sm:$0xff]  ;;  %1186 = vst.msk [vmem:[%s1963_s26 + $0x20] sm:$0xf] %vm1177_vm4, %v1466_v54  ;;  %v1026_v0 = vmax.f32 %v994_v56, 0.0  ;;  %v956_v3 = vmul.f32 %v1941_v2, %v917_v58 }
 0x131   : > { %1202 = vst.msk [vmem:[%s1963_s26 + $0x60] sm:$0xf] %vm1177_vm4, %v1482_v55  ;;  %v1042_v1 = vmax.f32 %v1010_v57, 0.0  ;;  %v972_v4 = vmul.f32 %v1941_v2, %v933_v59  ;;  %v763_v8 = vpop.f32.mrf.mxu0  ;;  %v827_v9 = vpop.f32.mrf.mxu1 }
 0x132   : > { %884 = vst.msk [vmem:[#allocation2 + $0x60] sm:$0xff] %vm305_vm0, %v851_v60  ;;  %900 = vst.msk [vmem:[#allocation2 + $0xe0] sm:$0xff] %vm305_vm0, %v867_v61  ;;  %v1467_v10 = vpack.c.bf16 %v1026_v0, %v1026_v0  ;;  %v995_v12 = vadd.f32 %v1946_v5, %v956_v3  ;;  %v852_v14 = vadd.f32 %v763_v8, %v351_v6 }
 0x133   : > { %v1483_v11 = vpack.c.bf16 %v1042_v1, %v1042_v1  ;;  %v1011_v13 = vadd.f32 %v1946_v5, %v972_v4  ;;  %v868_v15 = vadd.f32 %v827_v9, %v367_v7  ;;  %v765_v16 = vpop.f32.mrf.mxu0  ;;  %v829_v17 = vpop.f32.mrf.mxu1  ;;  %v918_v22 = vld [vmem:[#allocation2 + $0x58] sm:$0xff] }
 0x134   : > { %1187 = vst.msk [vmem:[%s1963_s26 + $0x24] sm:$0xf] %vm1177_vm4, %v1467_v10  ;;  %v1027_v20 = vmax.f32 %v995_v12, 0.0  ;;  %v934_v23 = vld [vmem:[#allocation2 + $0xd8] sm:$0xff]  ;;  %v957_v24 = vmul.f32 %v1941_v2, %v918_v22 }
 0x135   : > { %1203 = vst.msk [vmem:[%s1963_s26 + $0x64] sm:$0xf] %vm1177_vm4, %v1483_v11  ;;  %v1043_v21 = vmax.f32 %v1011_v13, 0.0  ;;  %v973_v25 = vmul.f32 %v1941_v2, %v934_v23  ;;  %v768_v26 = vpop.f32.mrf.mxu0  ;;  %v832_v27 = vpop.f32.mrf.mxu1 }
 0x136   : > { %885 = vst.msk [vmem:[#allocation2 + $0x68] sm:$0xff] %vm305_vm0, %v852_v14  ;;  %901 = vst.msk [vmem:[#allocation2 + $0xe8] sm:$0xff] %vm305_vm0, %v868_v15  ;;  %v1468_v28 = vpack.c.bf16 %v1027_v20, %v1027_v20  ;;  %v853_v30 = vadd.f32 %v768_v26, %v352_v18  ;;  %v869_v31 = vadd.f32 %v832_v27, %v368_v19 }
 0x137   : > { %v1484_v29 = vpack.c.bf16 %v1043_v21, %v1043_v21  ;;  %v996_v32 = vadd.f32 %v1946_v5, %v957_v24  ;;  %v1012_v33 = vadd.f32 %v1946_v5, %v973_v25  ;;  %v770_v34 = vpop.f32.mrf.mxu0  ;;  %v834_v35 = vpop.f32.mrf.mxu1 }
 0x138   : > { %1188 = vst.msk [vmem:[%s1963_s26 + $0x28] sm:$0xf] %vm1177_vm4, %v1468_v28 }
 0x139   : > { %1204 = vst.msk [vmem:[%s1963_s26 + $0x68] sm:$0xf] %vm1177_vm4, %v1484_v29  ;;  %v919_v38 = vld [vmem:[#allocation2 + $0x60] sm:$0xff]  ;;  %v1028_v40 = vmax.f32 %v996_v32, 0.0  ;;  %v1044_v41 = vmax.f32 %v1012_v33, 0.0  ;;  %v771_v44 = vpop.f32.mrf.mxu0  ;;  %v835_v45 = vpop.f32.mrf.mxu1 }
 0x13a   : > { %v935_v39 = vld [vmem:[#allocation2 + $0xe0] sm:$0xff]  ;;  %886 = vst.msk [vmem:[#allocation2 + $0x70] sm:$0xff] %vm305_vm0, %v853_v30  ;;  %902 = vst.msk [vmem:[#allocation2 + $0xf0] sm:$0xff] %vm305_vm0, %v869_v31  ;;  %v958_v42 = vmul.f32 %v1941_v2, %v919_v38  ;;  %v854_v46 = vadd.f32 %v771_v44, %v353_v36  ;;  %v870_v47 = vadd.f32 %v835_v45, %v369_v37 }
 0x13b   : > { %v974_v43 = vmul.f32 %v1941_v2, %v935_v39  ;;  %v1469_v48 = vpack.c.bf16 %v1028_v40, %v1028_v40  ;;  %v1485_v49 = vpack.c.bf16 %v1044_v41, %v1044_v41  ;;  %v773_v52 = vpop.f32.mrf.mxu0  ;;  %v837_v53 = vpop.f32.mrf.mxu1 }
 0x13c   : > { %v997_v50 = vadd.f32 %v1946_v5, %v958_v42  ;;  %887 = vst.msk [vmem:[#allocation2 + $0x78] sm:$0xff] %vm305_vm0, %v854_v46  ;;  %903 = vst.msk [vmem:[#allocation2 + $0xf8] sm:$0xff] %vm305_vm0, %v870_v47 }
 0x13d   : > { %v1013_v51 = vadd.f32 %v1946_v5, %v974_v43  ;;  %v920_v54 = vld [vmem:[#allocation2 + $0x68] sm:$0xff]  ;;  %1189 = vst.msk [vmem:[%s1963_s26 + $0x2c] sm:$0xf] %vm1177_vm4, %v1469_v48  ;;  %1205 = vst.msk [vmem:[%s1963_s26 + $0x6c] sm:$0xf] %vm1177_vm4, %v1485_v49 }
 0x13e   : > { %v936_v55 = vld [vmem:[#allocation2 + $0xe8] sm:$0xff]  ;;  %v1029_v56 = vmax.f32 %v997_v50, 0.0  ;;  %v959_v58 = vmul.f32 %v1941_v2, %v920_v54 }
 0x13f   : > { %v1045_v57 = vmax.f32 %v1013_v51, 0.0  ;;  %v975_v59 = vmul.f32 %v1941_v2, %v936_v55 }
 0x140   : > { %v1470_v60 = vpack.c.bf16 %v1029_v56, %v1029_v56  ;;  %v998_v62 = vadd.f32 %v1946_v5, %v959_v58 }
 0x141   : > { %v1486_v61 = vpack.c.bf16 %v1045_v57, %v1045_v57  ;;  %v1014_v63 = vadd.f32 %v1946_v5, %v975_v59  ;;  %v921_v0 = vld [vmem:[#allocation2 + $0x70] sm:$0xff] }
 0x142   : > { %v937_v1 = vld [vmem:[#allocation2 + $0xf0] sm:$0xff]  ;;  %v960_v3 = vmul.f32 %v1941_v2, %v921_v0  ;;  %1190 = vst.msk [vmem:[%s1963_s26 + $0x30] sm:$0xf] %vm1177_vm4, %v1470_v60  ;;  %v1030_v6 = vmax.f32 %v998_v62, 0.0 }
 0x143   : > { %v976_v4 = vmul.f32 %v1941_v2, %v937_v1  ;;  %1206 = vst.msk [vmem:[%s1963_s26 + $0x70] sm:$0xf] %vm1177_vm4, %v1486_v61  ;;  %v1046_v7 = vmax.f32 %v1014_v63, 0.0  ;;  %v922_v12 = vld [vmem:[#allocation2 + $0x78] sm:$0xff] }
 0x144   : > { %v999_v8 = vadd.f32 %v1946_v5, %v960_v3  ;;  %v1471_v10 = vpack.c.bf16 %v1030_v6, %v1030_v6  ;;  %v938_v13 = vld [vmem:[#allocation2 + $0xf8] sm:$0xff]  ;;  %v961_v16 = vmul.f32 %v1941_v2, %v922_v12 }
 0x145   : > { %v1015_v9 = vadd.f32 %v1946_v5, %v976_v4  ;;  %v1487_v11 = vpack.c.bf16 %v1046_v7, %v1046_v7  ;;  %v977_v17 = vmul.f32 %v1941_v2, %v938_v13 }
 0x146   : > { %v1031_v14 = vmax.f32 %v999_v8, 0.0  ;;  %1191 = vst.msk [vmem:[%s1963_s26 + $0x34] sm:$0xf] %vm1177_vm4, %v1471_v10  ;;  %v1000_v20 = vadd.f32 %v1946_v5, %v961_v16 }
 0x147   : > { %v1047_v15 = vmax.f32 %v1015_v9, 0.0  ;;  %1207 = vst.msk [vmem:[%s1963_s26 + $0x74] sm:$0xf] %vm1177_vm4, %v1487_v11  ;;  %v1016_v21 = vadd.f32 %v1946_v5, %v977_v17 }
 0x148   : > { %v1472_v18 = vpack.c.bf16 %v1031_v14, %v1031_v14  ;;  %v1032_v2 = vmax.f32 %v1000_v20, 0.0 }
 0x149   : > { %v1488_v19 = vpack.c.bf16 %v1047_v15, %v1047_v15  ;;  %v1048_v22 = vmax.f32 %v1016_v21, 0.0 }
 0x14a   : > { %1192 = vst.msk [vmem:[%s1963_s26 + $0x38] sm:$0xf] %vm1177_vm4, %v1472_v18  ;;  %v1473_v5 = vpack.c.bf16 %v1032_v2, %v1032_v2 }
 0x14b   : > { %1208 = vst.msk [vmem:[%s1963_s26 + $0x78] sm:$0xf] %vm1177_vm4, %v1488_v19  ;;  %v1489_v23 = vpack.c.bf16 %v1048_v22, %v1048_v22 }
 0x14c   : > { %1193 = vst.msk [vmem:[%s1963_s26 + $0x3c] sm:$0xf] %vm1177_vm4, %v1473_v5 }
 0x14d   : > { %1209 = vst.msk [vmem:[%s1963_s26 + $0x7c] sm:$0xf] %vm1177_vm4, %v1489_v23 }
 0x14e   : > { %1642 = shalt.err (!%p1639_p5)
}
 0x14f   : > { %s1643_s12 = scalar_lea.hbm %s2110_s7, 2048  ;;  %s1647_s21 = scalar_lea.hbm %s2169_s4, 4096 }
 0x150   : > { %p1644_p6 = scmp.ne.s32.totalorder %s2110_s7, %s1643_s12  ;;  %p1648_p10 = scmp.lt.s32.totalorder %s2110_s7, %s2169_s4 }
 0x151   : > { %p1649_p11 = scmp.lt.s32.totalorder %s1647_s21, %s1643_s12 }
 0x152   : > { %p1645_p7 = pnand %p1644_p6, %p1778_p4 }
 0x153   : > { %p1650_p12 = por %p1649_p11, %p1648_p10 }
 0x154   : > { %p1646_p9 = pneg %p1645_p7 }
 0x156   : > { %p1651_p13 = pnand %p1650_p12, %p1646_p9 }
 0x158   : > { %1654 = shalt.err (!%p1651_p13)
}
 0x159   : > { %s1711_s26 = smov 64   ;;  %s1712_s29 = smov 4  }
 0x15a   : > { %1511 = dma.vmem_to_hbm [thread:$0]  (%p1778_p4), %s2112_s30, 2048, %s2110_s7, %s2120_s18, %s1711_s26, %s1711_s26, %s1712_s29  }
 0x15b PF: > { %p1517_p0 = scmp.ge.s32.totalorder %s1705_s20, 2  ;;  %s1240_s5 = sand.u32 1, %s1685_s15  }
 0x15c   : > { %s1241_s6 = scalar_lea.sflag [#allocation4], %s1240_s5 }
 0x15d   : > { %p1514_p1 = pnand %p1517_p0, %p1785_p8 }
 0x15f   : > { %p1515_p2 = pneg %p1514_p1 }
 0x161   : > { %1680 = dma.done.wait (%p1515_p2), %s1241_s6, 2048  }
 0x162   : > { %1682 = vsyncadd (%p1515_p2), %s1241_s6, 4294965248  ;;  %s17_s20 = sadd.s32 1, %s1705_s20   ;;  %s2172_s15 = smov %s1689_s16 }
 0x163   : > { %p14_p3 = scmp.ge.s32.totalorder %s17_s20, 4   ;;  %s2173_s16 = smov %s1693_s17 }
 0x164   : > { %s2174_s17 = smov %s1791_s28  ;;  %s2175_s18 = smov %s1701_s19 }
 0x165   : > { %s2176_s19 = smov %s2178_s23  ;;  %16 = sbr.rel (!%p14_p3) target bundleno = 4 (0x4), region = 88 }
 0x16a   :  { %1246 = vsyncpa [#allocation4], 1 }
 0x16b   :  { %1248 = vsyncpa [#allocation4 + $0x1], 1 }

</bundles_post_ra>
